<compile_context>
chip_gen: v6e
topology: v6e:2x2x1
jax: 0.10.0
libtpu: 0.0.40
codegen_flags: <defaults>
</compile_context>

<pallas_src>
import functools

import jax
import jax.numpy as jnp
from jax import lax
from jax.experimental import pallas as pl
from jax.experimental.pallas import tpu as pltpu


def _gat_kernel(h_ref, adj_ref, w_ref, a1_ref, a2_ref, o_ref, wh_ref, *, alpha):
    def lrelu(x):
        return jnp.where(x > 0, x, alpha * x)

    h_v = h_ref[...]      # (V, NG, Fin)   vertex-major slab of NG graphs
    W = w_ref[...]        # (V, Fin, Fout)
    adj = adj_ref[...]    # (NG, V, V)
    a1 = a1_ref[...]      # (V, Fout)
    a2 = a2_ref[...]      # (V, Fout)
    V = W.shape[0]

    # Per-vertex linear transform on the MXU, batched over vertices:
    #   wh_v[k, g, e] = sum_f h_v[k, g, f] * W[k, f, e]
    wh_v = lax.dot_general(
        h_v, W,
        dimension_numbers=(((2,), (1,)), ((0,), (0,))),
        preferred_element_type=jnp.float32)              # (V, NG, Fout)

    # Layout swap (V, NG, Fout) -> (NG, V, Fout) through VMEM scratch. V is small
    # and static, so this unrolls to V cheap single-sublane stores.
    for k in range(V):
        wh_ref[:, k, :] = wh_v[k]
    Wh = lrelu(wh_ref[...])                              # (NG, V, Fout)

    # Attention logits: e[g, i, j] = lrelu( Wh[g,i]·a1[i] + Wh[g,j]·a2[j] )
    wh1 = jnp.sum(Wh * a1[None, :, :], axis=-1, keepdims=True)   # (NG, V, 1)
    wh2 = jnp.sum(Wh * a2[None, :, :], axis=-1)                  # (NG, V)
    e = lrelu(wh1 + wh2[:, None, :])                             # (NG, V, V)

    # Adjacency mask + numerically stable softmax over neighbours (last axis).
    neg = jnp.finfo(e.dtype).min
    att = jnp.where(adj > 0, e, neg)
    att = att - jnp.max(att, axis=-1, keepdims=True)
    p = jnp.exp(att)
    denom = jnp.sum(p, axis=-1, keepdims=True)                   # >= 1 by construction
    att = p * pl.reciprocal(denom, approx=True)

    # Aggregate neighbours on the MXU (leading batch dim = graphs):
    #   hp[g, i, e] = sum_j att[g, i, j] * Wh[g, j, e]
    hp = lax.dot_general(
        att, Wh,
        dimension_numbers=(((2,), (1,)), ((0,), (0,))),
        preferred_element_type=jnp.float32)              # (NG, V, Fout)

    o_ref[...] = lrelu(hp).astype(o_ref.dtype)


def gat_forward(h, adj, W, a, *, alpha):
    B, G, V, Fin = h.shape
    Fout = W.shape[-1]
    BG = B * G

    # >=2 parallel grid steps when possible so both v7x TensorCores get work;
    # a single step on odd BG (and v5e/v6e are fine either way).
    nsplit = 2 if (BG % 2 == 0 and BG >= 2) else 1
    NG = BG // nsplit

    # Parameter glue: split attention vector into its two halves.
    a1 = a[:, :Fout, 0]
    a2 = a[:, Fout:, 0]

    # Wrapper-side layout work (cheap XLA ops, outside the kernel).
    h_v = jnp.transpose(h.reshape(nsplit, NG, V, Fin), (0, 2, 1, 3))   # (nsplit, V, NG, Fin)
    adj_s = adj.reshape(nsplit, NG, V, V)

    kernel = functools.partial(_gat_kernel, alpha=alpha)

    flops = BG * 2 * V * Fout * (Fin + V + 2)
    transcendentals = BG * V * (V + 1)
    bytes_accessed = 4 * (h.size + adj.size + W.size + a1.size + a2.size
                          + BG * V * Fout)

    out = pl.pallas_call(
        kernel,
        out_shape=jax.ShapeDtypeStruct((nsplit, NG, V, Fout), h.dtype),
        grid=(nsplit,),
        in_specs=[
            pl.BlockSpec((None, V, NG, Fin), lambda i: (i, 0, 0, 0)),
            pl.BlockSpec((None, NG, V, V), lambda i: (i, 0, 0, 0)),
            pl.BlockSpec((V, Fin, Fout), lambda i: (0, 0, 0)),
            pl.BlockSpec((V, Fout), lambda i: (0, 0)),
            pl.BlockSpec((V, Fout), lambda i: (0, 0)),
        ],
        out_specs=pl.BlockSpec((None, NG, V, Fout), lambda i: (i, 0, 0, 0)),
        scratch_shapes=[pltpu.VMEM((NG, V, Fout), jnp.float32)],
        compiler_params=pltpu.CompilerParams(
            dimension_semantics=("parallel",),
            vmem_limit_bytes=32 * 1024 * 1024),
        cost_estimate=pl.CostEstimate(
            flops=flops,
            transcendentals=transcendentals,
            bytes_accessed=bytes_accessed),
    )(h_v, adj_s, W, a1, a2)

    return out.reshape(B, G, V, Fout)


def gat_reference(h, adj, W, a, *, alpha):
    """Pure-JAX reference mirroring the PyTorch forward."""
    Fout = W.shape[-1]
    lrelu = lambda x: jnp.where(x > 0, x, alpha * x)
    Wh = jnp.einsum('ijkh,khe->ijke', h, W)
    Wh = lrelu(Wh)
    wh1 = jnp.einsum('ijkh,khe->ijke', Wh, a[:, :Fout, :])
    wh2 = jnp.einsum('ijkh,khe->ijke', Wh, a[:, Fout:, :])
    e = lrelu(wh1 + jnp.transpose(wh2, (0, 1, 3, 2)))
    att = jnp.where(adj > 0, e, jnp.full_like(e, -9e15))
    att = jax.nn.softmax(att, axis=-1)
    hp = jnp.matmul(att, Wh)
    return lrelu(hp)


if __name__ == "__main__":
    B, G, V, Fin, Fout = 2, 3, 8, 16, 16
    alpha = 0.2

    key = jax.random.PRNGKey(0)
    k_h, k_w, k_a, k_adj = jax.random.split(key, 4)

    h = jax.random.normal(k_h, (B, G, V, Fin), dtype=jnp.float32)
    # Module __init__ uses zeros for W and a; use deterministic random values
    # instead so the forward path is non-degenerate.
    W = jax.random.normal(k_w, (V, Fin, Fout), dtype=jnp.float32) * 0.1
    a = jax.random.normal(k_a, (V, 2 * Fout, 1), dtype=jnp.float32) * 0.1

    adj = (jax.random.uniform(k_adj, (B, G, V, V)) > 0.5).astype(jnp.float32)
    adj = jnp.maximum(adj, jnp.eye(V, dtype=jnp.float32))  # self-loops

    out = jax.block_until_ready(gat_forward(h, adj, W, a, alpha=alpha))
    ref = gat_reference(h, adj, W, a, alpha=alpha)

    assert out.shape == (B, G, V, Fout)
    # Tolerance accounts for the approximate (EUP) reciprocal used in the
    # softmax normalization; any structural bug would be off by far more.
    assert jnp.allclose(out, ref, rtol=1e-2, atol=1e-2), "mismatch vs reference"

    print("KERNEL_OK")
</pallas_src>

<mosaic_0001>
module attributes {stable_mosaic.version = 11 : i64} {
  func.func @_gat_kernel(%arg0: i32, %arg1: memref<1x8x3x16xf32, #tpu.memory_space<vmem>>, %arg2: memref<1x3x8x8xf32, #tpu.memory_space<vmem>>, %arg3: memref<8x16x16xf32, #tpu.memory_space<vmem>>, %arg4: memref<8x16xf32, #tpu.memory_space<vmem>>, %arg5: memref<8x16xf32, #tpu.memory_space<vmem>>, %arg6: memref<1x3x8x16xf32, #tpu.memory_space<vmem>>, %arg7: memref<3x8x16xf32, #tpu.memory_space<vmem>>) attributes {dimension_semantics = [#tpu.dimension_semantics<parallel>], iteration_bounds = array<i64: 2>, scalar_prefetch = 0 : i64, scratch_operands = 1 : i64, tpu.core_type = #tpu.core_type<tc>, window_params = [{transform_indices = @transform_0, window_bounds = array<i64: 1, 8, 3, 16>}, {transform_indices = @transform_1, window_bounds = array<i64: 1, 3, 8, 8>}, {pipeline_mode = #tpu.pipeline_mode<synchronous>, transform_indices = @transform_2, window_bounds = array<i64: 8, 16, 16>}, {pipeline_mode = #tpu.pipeline_mode<synchronous>, transform_indices = @transform_3, window_bounds = array<i64: 8, 16>}, {pipeline_mode = #tpu.pipeline_mode<synchronous>, transform_indices = @transform_4, window_bounds = array<i64: 8, 16>}, {transform_indices = @transform_5, window_bounds = array<i64: 1, 3, 8, 16>}]} {
    %c0 = arith.constant 0 : index
    %c0_0 = arith.constant 0 : index
    %c0_1 = arith.constant 0 : index
    %c0_2 = arith.constant 0 : index
    %0 = vector.load %arg1[%c0, %c0_0, %c0_1, %c0_2] : memref<1x8x3x16xf32, #tpu.memory_space<vmem>>, vector<1x8x3x16xf32>
    %1 = vector.shape_cast %0 : vector<1x8x3x16xf32> to vector<8x3x16xf32>
    %c0_3 = arith.constant 0 : index
    %c0_4 = arith.constant 0 : index
    %c0_5 = arith.constant 0 : index
    %2 = vector.load %arg3[%c0_3, %c0_4, %c0_5] : memref<8x16x16xf32, #tpu.memory_space<vmem>>, vector<8x16x16xf32>
    %c0_6 = arith.constant 0 : index
    %c0_7 = arith.constant 0 : index
    %c0_8 = arith.constant 0 : index
    %c0_9 = arith.constant 0 : index
    %3 = vector.load %arg2[%c0_6, %c0_7, %c0_8, %c0_9] : memref<1x3x8x8xf32, #tpu.memory_space<vmem>>, vector<1x3x8x8xf32>
    %4 = vector.shape_cast %3 : vector<1x3x8x8xf32> to vector<3x8x8xf32>
    %c0_10 = arith.constant 0 : index
    %c0_11 = arith.constant 0 : index
    %5 = vector.load %arg4[%c0_10, %c0_11] : memref<8x16xf32, #tpu.memory_space<vmem>>, vector<8x16xf32>
    %c0_12 = arith.constant 0 : index
    %c0_13 = arith.constant 0 : index
    %6 = vector.load %arg5[%c0_12, %c0_13] : memref<8x16xf32, #tpu.memory_space<vmem>>, vector<8x16xf32>
    %cst = arith.constant dense<0.000000e+00> : vector<8x3x16xf32>
    %7 = tpu.matmul %1, %2, %cst {dimension_numbers = #tpu.dot_dimension_numbers<[2], [1], [1], [2], [0, 0, 0, 1, 1, 2], [0], [0]>} : vector<8x3x16xf32>, vector<8x16x16xf32>, vector<8x3x16xf32> -> vector<8x3x16xf32>
    %8 = vector.extract_strided_slice %7 {offsets = [0, 0, 0], sizes = [1, 3, 16], strides = [1, 1, 1]} : vector<8x3x16xf32> to vector<1x3x16xf32>
    %9 = vector.shape_cast %8 : vector<1x3x16xf32> to vector<3x16xf32>
    %c0_14 = arith.constant 0 : index
    %c0_15 = arith.constant 0 : index
    %c0_16 = arith.constant 0 : index
    %10 = vector.load %arg7[%c0_14, %c0_15, %c0_16] : memref<3x8x16xf32, #tpu.memory_space<vmem>>, vector<3x1x16xf32>
    %11 = vector.shape_cast %10 : vector<3x1x16xf32> to vector<3x16xf32>
    %12 = vector.shape_cast %9 : vector<3x16xf32> to vector<3x1x16xf32>
    tpu.vector_store %arg7[%c0_14, %c0_15, %c0_16], %12 {strides = array<i32>} : memref<3x8x16xf32, #tpu.memory_space<vmem>>, vector<3x1x16xf32>,
    %13 = vector.extract_strided_slice %7 {offsets = [1, 0, 0], sizes = [1, 3, 16], strides = [1, 1, 1]} : vector<8x3x16xf32> to vector<1x3x16xf32>
    %14 = vector.shape_cast %13 : vector<1x3x16xf32> to vector<3x16xf32>
    %c0_17 = arith.constant 0 : index
    %c1 = arith.constant 1 : index
    %c0_18 = arith.constant 0 : index
    %15 = vector.load %arg7[%c0_17, %c1, %c0_18] : memref<3x8x16xf32, #tpu.memory_space<vmem>>, vector<3x1x16xf32>
    %16 = vector.shape_cast %15 : vector<3x1x16xf32> to vector<3x16xf32>
    %17 = vector.shape_cast %14 : vector<3x16xf32> to vector<3x1x16xf32>
    tpu.vector_store %arg7[%c0_17, %c1, %c0_18], %17 {strides = array<i32>} : memref<3x8x16xf32, #tpu.memory_space<vmem>>, vector<3x1x16xf32>,
    %18 = vector.extract_strided_slice %7 {offsets = [2, 0, 0], sizes = [1, 3, 16], strides = [1, 1, 1]} : vector<8x3x16xf32> to vector<1x3x16xf32>
    %19 = vector.shape_cast %18 : vector<1x3x16xf32> to vector<3x16xf32>
    %c0_19 = arith.constant 0 : index
    %c2 = arith.constant 2 : index
    %c0_20 = arith.constant 0 : index
    %20 = vector.load %arg7[%c0_19, %c2, %c0_20] : memref<3x8x16xf32, #tpu.memory_space<vmem>>, vector<3x1x16xf32>
    %21 = vector.shape_cast %20 : vector<3x1x16xf32> to vector<3x16xf32>
    %22 = vector.shape_cast %19 : vector<3x16xf32> to vector<3x1x16xf32>
    tpu.vector_store %arg7[%c0_19, %c2, %c0_20], %22 {strides = array<i32>} : memref<3x8x16xf32, #tpu.memory_space<vmem>>, vector<3x1x16xf32>,
    %23 = vector.extract_strided_slice %7 {offsets = [3, 0, 0], sizes = [1, 3, 16], strides = [1, 1, 1]} : vector<8x3x16xf32> to vector<1x3x16xf32>
    %24 = vector.shape_cast %23 : vector<1x3x16xf32> to vector<3x16xf32>
    %c0_21 = arith.constant 0 : index
    %c3 = arith.constant 3 : index
    %c0_22 = arith.constant 0 : index
    %25 = vector.load %arg7[%c0_21, %c3, %c0_22] : memref<3x8x16xf32, #tpu.memory_space<vmem>>, vector<3x1x16xf32>
    %26 = vector.shape_cast %25 : vector<3x1x16xf32> to vector<3x16xf32>
    %27 = vector.shape_cast %24 : vector<3x16xf32> to vector<3x1x16xf32>
    tpu.vector_store %arg7[%c0_21, %c3, %c0_22], %27 {strides = array<i32>} : memref<3x8x16xf32, #tpu.memory_space<vmem>>, vector<3x1x16xf32>,
    %28 = vector.extract_strided_slice %7 {offsets = [4, 0, 0], sizes = [1, 3, 16], strides = [1, 1, 1]} : vector<8x3x16xf32> to vector<1x3x16xf32>
    %29 = vector.shape_cast %28 : vector<1x3x16xf32> to vector<3x16xf32>
    %c0_23 = arith.constant 0 : index
    %c4 = arith.constant 4 : index
    %c0_24 = arith.constant 0 : index
    %30 = vector.load %arg7[%c0_23, %c4, %c0_24] : memref<3x8x16xf32, #tpu.memory_space<vmem>>, vector<3x1x16xf32>
    %31 = vector.shape_cast %30 : vector<3x1x16xf32> to vector<3x16xf32>
    %32 = vector.shape_cast %29 : vector<3x16xf32> to vector<3x1x16xf32>
    tpu.vector_store %arg7[%c0_23, %c4, %c0_24], %32 {strides = array<i32>} : memref<3x8x16xf32, #tpu.memory_space<vmem>>, vector<3x1x16xf32>,
    %33 = vector.extract_strided_slice %7 {offsets = [5, 0, 0], sizes = [1, 3, 16], strides = [1, 1, 1]} : vector<8x3x16xf32> to vector<1x3x16xf32>
    %34 = vector.shape_cast %33 : vector<1x3x16xf32> to vector<3x16xf32>
    %c0_25 = arith.constant 0 : index
    %c5 = arith.constant 5 : index
    %c0_26 = arith.constant 0 : index
    %35 = vector.load %arg7[%c0_25, %c5, %c0_26] : memref<3x8x16xf32, #tpu.memory_space<vmem>>, vector<3x1x16xf32>
    %36 = vector.shape_cast %35 : vector<3x1x16xf32> to vector<3x16xf32>
    %37 = vector.shape_cast %34 : vector<3x16xf32> to vector<3x1x16xf32>
    tpu.vector_store %arg7[%c0_25, %c5, %c0_26], %37 {strides = array<i32>} : memref<3x8x16xf32, #tpu.memory_space<vmem>>, vector<3x1x16xf32>,
    %38 = vector.extract_strided_slice %7 {offsets = [6, 0, 0], sizes = [1, 3, 16], strides = [1, 1, 1]} : vector<8x3x16xf32> to vector<1x3x16xf32>
    %39 = vector.shape_cast %38 : vector<1x3x16xf32> to vector<3x16xf32>
    %c0_27 = arith.constant 0 : index
    %c6 = arith.constant 6 : index
    %c0_28 = arith.constant 0 : index
    %40 = vector.load %arg7[%c0_27, %c6, %c0_28] : memref<3x8x16xf32, #tpu.memory_space<vmem>>, vector<3x1x16xf32>
    %41 = vector.shape_cast %40 : vector<3x1x16xf32> to vector<3x16xf32>
    %42 = vector.shape_cast %39 : vector<3x16xf32> to vector<3x1x16xf32>
    tpu.vector_store %arg7[%c0_27, %c6, %c0_28], %42 {strides = array<i32>} : memref<3x8x16xf32, #tpu.memory_space<vmem>>, vector<3x1x16xf32>,
    %43 = vector.extract_strided_slice %7 {offsets = [7, 0, 0], sizes = [1, 3, 16], strides = [1, 1, 1]} : vector<8x3x16xf32> to vector<1x3x16xf32>
    %44 = vector.shape_cast %43 : vector<1x3x16xf32> to vector<3x16xf32>
    %c0_29 = arith.constant 0 : index
    %c7 = arith.constant 7 : index
    %c0_30 = arith.constant 0 : index
    %45 = vector.load %arg7[%c0_29, %c7, %c0_30] : memref<3x8x16xf32, #tpu.memory_space<vmem>>, vector<3x1x16xf32>
    %46 = vector.shape_cast %45 : vector<3x1x16xf32> to vector<3x16xf32>
    %47 = vector.shape_cast %44 : vector<3x16xf32> to vector<3x1x16xf32>
    tpu.vector_store %arg7[%c0_29, %c7, %c0_30], %47 {strides = array<i32>} : memref<3x8x16xf32, #tpu.memory_space<vmem>>, vector<3x1x16xf32>,
    %c0_31 = arith.constant 0 : index
    %c0_32 = arith.constant 0 : index
    %c0_33 = arith.constant 0 : index
    %48 = vector.load %arg7[%c0_31, %c0_32, %c0_33] : memref<3x8x16xf32, #tpu.memory_space<vmem>>, vector<3x8x16xf32>
    %cst_34 = arith.constant 0.000000e+00 : f32
    %49 = vector.broadcast %cst_34 : f32 to vector<3x8x16xf32>
    %50 = arith.cmpf ogt, %48, %49 : vector<3x8x16xf32>
    %cst_35 = arith.constant 2.000000e-01 : f32
    %51 = vector.broadcast %cst_35 : f32 to vector<3x8x16xf32>
    %52 = arith.mulf %51, %48 : vector<3x8x16xf32>
    %53 = arith.select %50, %48, %52 : vector<3x8x16xi1>, vector<3x8x16xf32>
    %54 = vector.shape_cast %5 : vector<8x16xf32> to vector<1x8x16xf32>
    %55 = vector.broadcast %54 : vector<1x8x16xf32> to vector<3x8x16xf32>
    %56 = arith.mulf %53, %55 : vector<3x8x16xf32>
    %cst_36 = arith.constant dense<0.000000e+00> : vector<3x8xf32>
    %57 = vector.multi_reduction <add>, %56, %cst_36 [2] : vector<3x8x16xf32> to vector<3x8xf32>
    %58 = vector.shape_cast %57 : vector<3x8xf32> to vector<3x8x1xf32>
    %59 = vector.shape_cast %6 : vector<8x16xf32> to vector<1x8x16xf32>
    %60 = vector.broadcast %59 : vector<1x8x16xf32> to vector<3x8x16xf32>
    %61 = arith.mulf %53, %60 : vector<3x8x16xf32>
    %cst_37 = arith.constant dense<0.000000e+00> : vector<3x8xf32>
    %62 = vector.multi_reduction <add>, %61, %cst_37 [2] : vector<3x8x16xf32> to vector<3x8xf32>
    %63 = vector.shape_cast %62 : vector<3x8xf32> to vector<3x1x8xf32>
    %64 = vector.broadcast %58 : vector<3x8x1xf32> to vector<3x8x8xf32>
    %65 = vector.broadcast %63 : vector<3x1x8xf32> to vector<3x8x8xf32>
    %66 = arith.addf %64, %65 : vector<3x8x8xf32>
    %cst_38 = arith.constant 0.000000e+00 : f32
    %67 = vector.broadcast %cst_38 : f32 to vector<3x8x8xf32>
    %68 = arith.cmpf ogt, %66, %67 : vector<3x8x8xf32>
    %cst_39 = arith.constant 2.000000e-01 : f32
    %69 = vector.broadcast %cst_39 : f32 to vector<3x8x8xf32>
    %70 = arith.mulf %69, %66 : vector<3x8x8xf32>
    %71 = arith.select %68, %66, %70 : vector<3x8x8xi1>, vector<3x8x8xf32>
    %cst_40 = arith.constant 0.000000e+00 : f32
    %72 = vector.broadcast %cst_40 : f32 to vector<3x8x8xf32>
    %73 = arith.cmpf ogt, %4, %72 : vector<3x8x8xf32>
    %cst_41 = arith.constant -3.40282347E+38 : f32
    %74 = vector.broadcast %cst_41 : f32 to vector<3x8x8xf32>
    %75 = arith.select %73, %71, %74 : vector<3x8x8xi1>, vector<3x8x8xf32>
    %cst_42 = arith.constant dense<0xFF800000> : vector<3x8xf32>
    %76 = vector.multi_reduction <maximumf>, %75, %cst_42 [2] : vector<3x8x8xf32> to vector<3x8xf32>
    %77 = vector.shape_cast %76 : vector<3x8xf32> to vector<3x8x1xf32>
    %78 = vector.broadcast %77 : vector<3x8x1xf32> to vector<3x8x8xf32>
    %79 = arith.subf %75, %78 : vector<3x8x8xf32>
    %80 = math.exp %79 : vector<3x8x8xf32>
    %cst_43 = arith.constant dense<0.000000e+00> : vector<3x8xf32>
    %81 = vector.multi_reduction <add>, %80, %cst_43 [2] : vector<3x8x8xf32> to vector<3x8xf32>
    %82 = vector.shape_cast %81 : vector<3x8xf32> to vector<3x8x1xf32>
    %83 = tpu.reciprocal %82 {approx = true} : vector<3x8x1xf32> -> vector<3x8x1xf32>
    %84 = vector.broadcast %83 : vector<3x8x1xf32> to vector<3x8x8xf32>
    %85 = arith.mulf %80, %84 : vector<3x8x8xf32>
    %cst_44 = arith.constant dense<0.000000e+00> : vector<3x8x16xf32>
    %86 = tpu.matmul %85, %53, %cst_44 {dimension_numbers = #tpu.dot_dimension_numbers<[2], [1], [1], [2], [0, 0, 0, 1, 1, 2], [0], [0]>} : vector<3x8x8xf32>, vector<3x8x16xf32>, vector<3x8x16xf32> -> vector<3x8x16xf32>
    %cst_45 = arith.constant 0.000000e+00 : f32
    %87 = vector.broadcast %cst_45 : f32 to vector<3x8x16xf32>
    %88 = arith.cmpf ogt, %86, %87 : vector<3x8x16xf32>
    %cst_46 = arith.constant 2.000000e-01 : f32
    %89 = vector.broadcast %cst_46 : f32 to vector<3x8x16xf32>
    %90 = arith.mulf %89, %86 : vector<3x8x16xf32>
    %91 = arith.select %88, %86, %90 : vector<3x8x16xi1>, vector<3x8x16xf32>
    %c0_47 = arith.constant 0 : index
    %c0_48 = arith.constant 0 : index
    %c0_49 = arith.constant 0 : index
    %c0_50 = arith.constant 0 : index
    %92 = vector.load %arg6[%c0_47, %c0_48, %c0_49, %c0_50] : memref<1x3x8x16xf32, #tpu.memory_space<vmem>>, vector<1x3x8x16xf32>
    %93 = vector.shape_cast %92 : vector<1x3x8x16xf32> to vector<3x8x16xf32>
    %94 = vector.shape_cast %91 : vector<3x8x16xf32> to vector<1x3x8x16xf32>
    tpu.vector_store %arg6[%c0_47, %c0_48, %c0_49, %c0_50], %94 {strides = array<i32>} : memref<1x3x8x16xf32, #tpu.memory_space<vmem>>, vector<1x3x8x16xf32>,
    return
  }
  func.func @transform_0(%arg0: i32) -> (i32, i32, i32, i32) {
    %c0_i32 = arith.constant 0 : i32
    %c0_i32_0 = arith.constant 0 : i32
    %c0_i32_1 = arith.constant 0 : i32
    %c0_i32_2 = arith.constant 0 : i32
    return %arg0, %c0_i32, %c0_i32_0, %c0_i32_1 : i32, i32, i32, i32
  }
  func.func @transform_1(%arg0: i32) -> (i32, i32, i32, i32) {
    %c0_i32 = arith.constant 0 : i32
    %c0_i32_0 = arith.constant 0 : i32
    %c0_i32_1 = arith.constant 0 : i32
    %c0_i32_2 = arith.constant 0 : i32
    return %arg0, %c0_i32, %c0_i32_0, %c0_i32_1 : i32, i32, i32, i32
  }
  func.func @transform_2(%arg0: i32) -> (i32, i32, i32) {
    %c0_i32 = arith.constant 0 : i32
    %c0_i32_0 = arith.constant 0 : i32
    %c0_i32_1 = arith.constant 0 : i32
    %c0_i32_2 = arith.constant 0 : i32
    return %c0_i32, %c0_i32_0, %c0_i32_1 : i32, i32, i32
  }
  func.func @transform_3(%arg0: i32) -> (i32, i32) {
    %c0_i32 = arith.constant 0 : i32
    %c0_i32_0 = arith.constant 0 : i32
    %c0_i32_1 = arith.constant 0 : i32
    return %c0_i32, %c0_i32_0 : i32, i32
  }
  func.func @transform_4(%arg0: i32) -> (i32, i32) {
    %c0_i32 = arith.constant 0 : i32
    %c0_i32_0 = arith.constant 0 : i32
    %c0_i32_1 = arith.constant 0 : i32
    return %c0_i32, %c0_i32_0 : i32, i32
  }
  func.func @transform_5(%arg0: i32) -> (i32, i32, i32, i32) {
    %c0_i32 = arith.constant 0 : i32
    %c0_i32_0 = arith.constant 0 : i32
    %c0_i32_1 = arith.constant 0 : i32
    %c0_i32_2 = arith.constant 0 : i32
    return %arg0, %c0_i32, %c0_i32_0, %c0_i32_1 : i32, i32, i32, i32
  }
}

</mosaic_0001>

<bundles_post_ra>
// kernel: tpu_custom_call.1
= control target key start
LH: loop header
LB: loop body
LE: loop exit
PB: predicated region body
PF: predicated region fallthrough
CT: control target
= control target key end

     0   :  { %10 = vsyncpa [#allocation4], 0  ;;  %s2174_s0 = inlined_call_operand.vmem [shape: f32[2,8,3,16], index: 0, kind: input, shape index: {}]   ;;  %s2175_s1 = inlined_call_operand.vmem [shape: f32[2,3,8,8], index: 1, kind: input, shape index: {}]   ;;  %s2176_s2 = inlined_call_operand.hbm [shape: f32[8,16,16], index: 2, kind: input, shape index: {}]   ;;  %s2177_s3 = inlined_call_operand.vmem [shape: f32[8,16], index: 3, kind: input, shape index: {}]   ;;  %s2178_s4 = inlined_call_operand.vmem [shape: f32[8,16], index: 4, kind: input, shape index: {}]   ;;  %s2179_s5 = inlined_call_operand.hbm [shape: f32[2,3,8,16], index: 5, kind: output, shape index: {}]  }
   0x1   :  { %11 = vsyncpa [#allocation5], 0 }
   0x2   :  { %13 = vsyncpa [#allocation5 + $0x1], 0  ;;  %s1904_s18 = smov 0   ;;  %s1906_s19 = smov 0  }
   0x3   :  { %s1908_s20 = smov 0   ;;  %s1910_s21 = smov 0  }
   0x4 LB: > { %s1925_s22 = sadd.s32 4294967295, %s1863_s21   ;;  %s1576_s23 = sadd.s32 4294967294, %s1863_s21   ;;  %s1863_s21 = sphi %s1910_s21, %s2187_s21   ;;  %s1859_s20 = sphi %s1908_s20, %s2186_s20   ;;  %s1855_s19 = sphi %s1906_s19, %s2185_s19   ;;  %s1851_s18 = sphi %s1904_s18, %s2184_s18  }
   0x5   : > { %s1929_s24 = sadd.s32 1, %s1863_s21   ;;  %s141_s25 = sadd.s32 1, %s1859_s20 }
   0x6   : > { %s138_s26 = ssub.s32 %s1863_s21, %s1929_s24  ;;  %p151_p0 = scmp.ne.s32.totalorder %s1859_s20, %s1855_s19 }
   0x7   : > { %p139_p1 = scmp.eq.s32.totalorder %s138_s26, 0  ;;  %p152_p2 = scmp.eq.s32.totalorder %s1925_s22, 1 }
   0x8   : > { %p157_p3 = scmp.ne.s32.totalorder %s1855_s19, %s1851_s18  ;;  %p158_p4 = scmp.eq.s32.totalorder %s1576_s23, 1 }
   0x9   : > { %s1940_s27 = scalar_select %p139_p1, %s1859_s20, %s141_s25  }
   0xa   : > { %p1942_p5 = por %p152_p2, %p151_p0  ;;  %p1946_p6 = por %p158_p4, %p157_p3 }
   0xb   : > { %p1577_p7 = scmp.ge.s32.totalorder %s1863_s21, 1  ;;  %p165_p8 = scmp.lt.s32.totalorder %s1863_s21, 3 }
   0xc   : > { %s2181_s29 = scalar_select %p1946_p6, 1, 0 }
   0xd   : > { %p1718_p9 = scmp.eq.s32.totalorder %s1925_s22, 0  ;;  %p1953_p10 = pnand %p1577_p7, %p165_p8 }
   0xe   : > { %s1865_s6 = smov [#allocation3]  }
   0xf   : > { %s177_s7 = sshll.u32 %s1865_s6, 4  ;;  %p1710_p11 = pneg %p1953_p10  ;;  %s178_s7 = int_to_ptr.vmem [resolvable:$true] %s177_s7 }
  0x10   : > { %s1784_s8 = scalar_lea.vmem %s178_s7, 2048  ;;  %p1792_p3 = scmp.lt.s32.totalorder %s178_s7, %s178_s7 }
  0x11   : > { %p1711_p12 = pnand %p1718_p9, %p1710_p11  ;;  %p1785_p0 = scmp.ne.s32.totalorder %s178_s7, %s1784_s8 }
  0x12   : > { %p1793_p4 = scmp.lt.s32.totalorder %s1784_s8, %s1784_s8 }
  0x13   : > { %p1775_p13 = pneg %p1711_p12 }
  0x14   : > { %p1794_p6 = por %p1793_p4, %p1792_p3 }
  0x15   : > { %p1787_p1 = pnand %p1785_p0, %p1775_p13 }
  0x17   : > { %p1788_p2 = pneg %p1787_p1 }
  0x19   : > { %p1795_p7 = pnand %p1794_p6, %p1788_p2 }
  0x1b   : > { %1798 = shalt.err (!%p1795_p7)
}
  0x1c   : > { %s1866_s9 = smov 128   ;;  %s1867_s10 = smov 8  }
  0x1d   : > { %1713 = dma.hbm_to_vmem [thread:$0]  (!%p1711_p12), %s2176_s2, 2048, %s178_s7, [#allocation4], %s1866_s9, %s1866_s9, %s1867_s10  }
  0x1e   : > { %215 = sbr.rel (%p1953_p10) target bundleno = 948 (0x3b4), region = 40 }
  0x23   : > { %1842 = dma.done.wait (%p1718_p9), [#allocation4], 2048  }
  0x24   : > { %1844 = vsyncadd (%p1718_p9), [#allocation4], 4294965248  ;;  %p248_p8 = scmp.lt.s32.totalorder %s1925_s22, 1  ;;  %v1868_v0 = vmov 0.0   ;;  %vm1869_vm0 = vmmov 0   ;;  %v267_v1 = vld [vmem:[#allocation3 + $0x8] sm:$0xff]  ;;  %v876_v25 = vlaneseq }
  0x25   : > { %1630 = vmatprep.subr.mxu0 %v1868_v0  ;;  %1637 = vmatprep.subr.mxu1 %v1868_v0  ;;  %v269_v2 = vld [vmem:[#allocation3 + $0x18] sm:$0xff]  ;;  %v266_v3 = vld [vmem:[#allocation3] sm:$0xff]  ;;  %v268_v4 = vld [vmem:[#allocation3 + $0x10] sm:$0xff]  ;;  %vm287_vm1 = vcmask 130048   ;;  %v1870_v29 = vmov 1966171168  }
  0x26   : > { %1634 = vmatprep.mubr.msk.f32.mxu0 %vm1869_vm0, %v1868_v0  ;;  %1641 = vmatprep.mubr.msk.f32.mxu1 %vm1869_vm0, %v1868_v0  ;;  %s1978_s13 = scalar_select %p248_p8, %s1925_s22, 1  ;;  %v271_v7 = vld [vmem:[#allocation3 + $0x28] sm:$0xff]  ;;  %v273_v8 = vld [vmem:[#allocation3 + $0x38] sm:$0xff]  ;;  %v270_v9 = vld [vmem:[#allocation3 + $0x20] sm:$0xff]  ;;  %v877_v26 = vshrl.u32 %v876_v25, 7  ;;  %v1153_v27 = vand.u32 127, %v876_v25  ;;  %v874_v30 = vunpack.c.l.s4 %v1870_v29 }
  0x27   : > { %1631 = vmatpush3.msra.mxu0 %v267_v1  ;;  %1638 = vmatpush3.msra.mxu1 %v269_v2  ;;  %v272_v10 = vld [vmem:[#allocation3 + $0x30] sm:$0xff]  ;;  %v275_v13 = vld [vmem:[#allocation3 + $0x48] sm:$0xff]  ;;  %v277_v14 = vld [vmem:[#allocation3 + $0x58] sm:$0xff]  ;;  %vm899_vm2 = vcmask 122880   ;;  %vm1211_vm8 = vcmask 64512   ;;  %s245_s10 = sand.u32 1, %s1855_s19  }
  0x28   : > { %s1599_s14 = sshll.u32 %s1978_s13, 5  ;;  %1632 = vmatprep.subr.mxu0 %v1868_v0  ;;  %1639 = vmatprep.subr.mxu1 %v1868_v0  ;;  %v274_v15 = vld [vmem:[#allocation3 + $0x40] sm:$0xff]  ;;  %v276_v16 = vld [vmem:[#allocation3 + $0x50] sm:$0xff]  ;;  %v279_v19 = vld [vmem:[#allocation3 + $0x68] sm:$0xff]  ;;  %v2034_v28 = vsub.s32 %v1153_v27, %v877_v26  ;;  %v875_v31 = vunpack.c.0.s8 %v874_v30  ;;  %s1702_s6 = smul.u32 24, %s1978_s13 }
  0x29   : > { %s1984_s17 = scalar_lea.vmem %s2174_s0, %s1599_s14  ;;  %1633 = vmatpush3.msra.mxu0 %v266_v3  ;;  %1640 = vmatpush3.msra.mxu1 %v268_v4  ;;  %v281_v20 = vld [vmem:[#allocation3 + $0x78] sm:$0xff]  ;;  %v278_v21 = vld [vmem:[#allocation3 + $0x60] sm:$0xff]  ;;  %v280_v22 = vld [vmem:[#allocation3 + $0x70] sm:$0xff]  ;;  %s1701_s11 = smul.u32 24, %s245_s10 }
  0x2a   : > { %v258_v5 = vld [vmem:[%s1984_s17] sm:$0x7]  ;;  %v259_v6 = vld [vmem:[%s1984_s17 + $0x4] sm:$0x7]  ;;  %1644 = vmatprep.subr.mxu0 %v1868_v0  ;;  %1651 = vmatprep.subr.mxu1 %v1868_v0  ;;  %v260_v11 = vld [vmem:[%s1984_s17 + $0x8] sm:$0x7]  ;;  %v2036_v32 = vsub.s32 %v875_v31, %v877_v26  ;;  %s257_s9 = scalar_lea.vmem %s2175_s1, %s1702_s6 }
  0x2b   : > { %1635 = vmatmul.mubr.msk.f32.vlgmr.msra.gmra.mxu0 %vm287_vm1, %v258_v5  ;;  %1642 = vmatmul.mubr.msk.f32.vlgmr.msra.gmra.mxu1 %vm287_vm1, %v259_v6  ;;  %v261_v12 = vld [vmem:[%s1984_s17 + $0xc] sm:$0x7]  ;;  %v262_v17 = vld [vmem:[%s1984_s17 + $0x10] sm:$0x7]  ;;  %v263_v18 = vld [vmem:[%s1984_s17 + $0x14] sm:$0x7] }
  0x2c   : > { %1645 = vmatpush3.msra.mxu0 %v271_v7  ;;  %1652 = vmatpush3.msra.mxu1 %v273_v8  ;;  %v264_v23 = vld [vmem:[%s1984_s17 + $0x18] sm:$0x7]  ;;  %v265_v24 = vld [vmem:[%s1984_s17 + $0x1c] sm:$0x7]  ;;  %v286_v29 = vld [vmem:[%s2178_s4] sm:$0xff]  ;;  %s247_s12 = scalar_lea.vmem [#allocation6], %s1701_s11 }
  0x2d   : > { %1646 = vmatprep.subr.mxu0 %v1868_v0  ;;  %1653 = vmatprep.subr.mxu1 %v1868_v0  ;;  %s1490_s13 = sshll.u32 %s247_s12, 4  ;;  %s1703_s14 = smul.u32 384, %s1925_s22  ;;  %s2125_s13 = int_to_ptr.vmem [resolvable:$true] %s1490_s13 }
  0x2e   : > { %1647 = vmatpush3.msra.mxu0 %v270_v9  ;;  %1648 = vmatprep.mubr.msk.f32.mxu0 %vm1869_vm0, %v1868_v0  ;;  %s2134_s17 = scalar_lea.sflag [#allocation5], %s245_s10  ;;  %s1799_s23 = scalar_lea.vmem %s2125_s13, 384 }
  0x2f   : > { %1654 = vmatpush3.msra.mxu1 %v272_v10  ;;  %1655 = vmatprep.mubr.msk.f32.mxu1 %vm1869_vm0, %v1868_v0  ;;  %s2131_s22 = scalar_lea.hbm %s2179_s5, %s1703_s14  ;;  %p1800_p6 = scmp.ne.s32.totalorder %s2125_s13, %s1799_s23 }
  0x30   : > { %1649 = vmatmul.mubr.msk.f32.vlgmr.msra.gmra.mxu0 %vm287_vm1, %v260_v11  ;;  %1656 = vmatmul.mubr.msk.f32.vlgmr.msra.gmra.mxu1 %vm287_vm1, %v261_v12  ;;  %s1871_s25 = smov [#allocation6]  }
  0x31   : > { %1658 = vmatprep.subr.mxu0 %v1868_v0  ;;  %1665 = vmatprep.subr.mxu1 %v1868_v0  ;;  %p1801_p9 = pnand %p1800_p6, %p1942_p5  ;;  %s1803_s26 = sshll.u32 %s1871_s25, 4  ;;  %s1804_s26 = int_to_ptr.vmem [resolvable:$false] %s1803_s26 }
  0x32   : > { %1659 = vmatpush3.msra.mxu0 %v275_v13  ;;  %1666 = vmatpush3.msra.mxu1 %v277_v14  ;;  %s1805_s30 = scalar_lea.vmem %s1804_s26, 768  ;;  %p1806_p11 = scmp.lt.s32.totalorder %s2125_s13, %s1804_s26 }
  0x33   : > { %1660 = vmatprep.subr.mxu0 %v1868_v0  ;;  %1667 = vmatprep.subr.mxu1 %v1868_v0  ;;  %p1802_p10 = pneg %p1801_p9  ;;  %p1807_p12 = scmp.lt.s32.totalorder %s1805_s30, %s1799_s23 }
  0x34   : > { %1661 = vmatpush3.msra.mxu0 %v274_v15  ;;  %1662 = vmatprep.mubr.msk.f32.mxu0 %vm1869_vm0, %v1868_v0 }
  0x35   : > { %1668 = vmatpush3.msra.mxu1 %v276_v16  ;;  %1669 = vmatprep.mubr.msk.f32.mxu1 %vm1869_vm0, %v1868_v0  ;;  %p1808_p13 = por %p1807_p12, %p1806_p11 }
  0x36   : > { %1663 = vmatmul.mubr.msk.f32.vlgmr.msra.gmra.mxu0 %vm287_vm1, %v262_v17  ;;  %1670 = vmatmul.mubr.msk.f32.vlgmr.msra.gmra.mxu1 %vm287_vm1, %v263_v18 }
  0x37   : > { %1672 = vmatprep.subr.mxu0 %v1868_v0  ;;  %1679 = vmatprep.subr.mxu1 %v1868_v0  ;;  %p1809_p0 = pnand %p1808_p13, %p1802_p10 }
  0x38   : > { %1673 = vmatpush3.msra.mxu0 %v279_v19  ;;  %1680 = vmatpush3.msra.mxu1 %v281_v20 }
  0x39   : > { %1674 = vmatprep.subr.mxu0 %v1868_v0  ;;  %1681 = vmatprep.subr.mxu1 %v1868_v0 }
  0x3a   : > { %1675 = vmatpush3.msra.mxu0 %v278_v21  ;;  %1676 = vmatprep.mubr.msk.f32.mxu0 %vm1869_vm0, %v1868_v0 }
  0x3b   : > { %1682 = vmatpush3.msra.mxu1 %v280_v22  ;;  %1683 = vmatprep.mubr.msk.f32.mxu1 %vm1869_vm0, %v1868_v0 }
  0x3c   : > { %1677 = vmatmul.mubr.msk.f32.vlgmr.msra.gmra.mxu0 %vm287_vm1, %v264_v23  ;;  %1684 = vmatmul.mubr.msk.f32.vlgmr.msra.gmra.mxu1 %vm287_vm1, %v265_v24 }
  0x3d   : > { %1686 = vmatprep.subr.mxu0 %v1868_v0  ;;  %1691 = vmatprep.subr.mxu1 %v1868_v0 }
  0x3e   : > { %1688 = vmatprep.mubr.msk.f32.mxu0 %vm1869_vm0, %v1868_v0  ;;  %1693 = vmatprep.mubr.msk.f32.mxu1 %vm1869_vm0, %v1868_v0 }
  0xeb   : > { %v357_v33 = vpop.f32.mrf.mxu0  ;;  %v430_v34 = vpop.f32.mrf.mxu1 }
  0xec   : > { %v879_v35 = vrot.slane %v357_v33, %v2036_v32  ;;  %v910_v36 = vrot.slane %v430_v34, %v2036_v32  ;;  %v285_v34 = vld [vmem:[%s2177_s3] sm:$0xff] }
  0xed   : > { %v1636_v37 = vpop.f32.mrf.mxu0  ;;  %v1643_v38 = vpop.f32.mrf.mxu1 }
  0xee   : > { %v880_v39 = vcombine.high %v879_v35, %v879_v35  ;;  %v887_v40 = vrot.slane %v879_v35, %v2036_v32  ;;  %v911_v41 = vcombine.high %v910_v36, %v910_v36  ;;  %v918_v42 = vrot.slane %v910_v36, %v2036_v32 }
  0xf0   : > { %v894_v43 = vrot.slane %v880_v39, %v2036_v32  ;;  %v895_v44 = vcombine.high %v887_v40, %v887_v40  ;;  %900 = vst.msk [vmem:[#allocation2] sm:$0x1] %vm899_vm2, %v887_v40  ;;  %v925_v45 = vrot.slane %v911_v41, %v2036_v32  ;;  %v926_v46 = vcombine.high %v918_v42, %v918_v42  ;;  %v503_v47 = vpop.f32.mrf.mxu0  ;;  %v576_v48 = vpop.f32.mrf.mxu1 }
  0xf1   : > { %930 = vst.msk [vmem:[#allocation2 + $0x1] sm:$0x1] %vm899_vm2, %v918_v42  ;;  %v940_v49 = vrot.slane %v503_v47, %v2036_v32  ;;  %v970_v50 = vrot.slane %v576_v48, %v2036_v32 }
  0xf2   : > { %901 = vst.msk [vmem:[#allocation2 + $0x8] sm:$0x1] %vm899_vm2, %v894_v43  ;;  %902 = vst.msk [vmem:[#allocation2 + $0x10] sm:$0x1] %vm899_vm2, %v895_v44  ;;  %v1650_v51 = vpop.f32.mrf.mxu0  ;;  %v1657_v52 = vpop.f32.mrf.mxu1 }
  0xf3   : > { %931 = vst.msk [vmem:[#allocation2 + $0x9] sm:$0x1] %vm899_vm2, %v925_v45  ;;  %932 = vst.msk [vmem:[#allocation2 + $0x11] sm:$0x1] %vm899_vm2, %v926_v46  ;;  %v941_v53 = vcombine.high %v940_v49, %v940_v49  ;;  %v948_v54 = vrot.slane %v940_v49, %v2036_v32  ;;  %v971_v55 = vcombine.high %v970_v50, %v970_v50 }
  0xf4   : > { %v978_v56 = vrot.slane %v970_v50, %v2036_v32 }
  0xf5   : > { %v955_v57 = vrot.slane %v941_v53, %v2036_v32  ;;  %v956_v58 = vcombine.high %v948_v54, %v948_v54  ;;  %960 = vst.msk [vmem:[#allocation2 + $0x2] sm:$0x1] %vm899_vm2, %v948_v54  ;;  %v985_v59 = vrot.slane %v971_v55, %v2036_v32  ;;  %v282_v54 = vld [vmem:[%s257_s9] sm:$0xff] }
  0xf6   : > { %v986_v60 = vcombine.high %v978_v56, %v978_v56  ;;  %990 = vst.msk [vmem:[#allocation2 + $0x3] sm:$0x1] %vm899_vm2, %v978_v56  ;;  %v649_v61 = vpop.f32.mrf.mxu0  ;;  %v722_v62 = vpop.f32.mrf.mxu1  ;;  %vm1205_vm7 = vcmp.gt.f32.partialorder %v282_v54, 0.0 }
  0xf7   : > { %961 = vst.msk [vmem:[#allocation2 + $0xa] sm:$0x1] %vm899_vm2, %v955_v57  ;;  %962 = vst.msk [vmem:[#allocation2 + $0x12] sm:$0x1] %vm899_vm2, %v956_v58  ;;  %v1000_v63 = vrot.slane %v649_v61, %v2036_v32  ;;  %v1030_v1 = vrot.slane %v722_v62, %v2036_v32 }
  0xf8   : > { %991 = vst.msk [vmem:[#allocation2 + $0xb] sm:$0x1] %vm899_vm2, %v985_v59  ;;  %992 = vst.msk [vmem:[#allocation2 + $0x13] sm:$0x1] %vm899_vm2, %v986_v60  ;;  %v1664_v2 = vpop.f32.mrf.mxu0  ;;  %v1671_v3 = vpop.f32.mrf.mxu1  ;;  %v283_v59 = vld [vmem:[%s257_s9 + $0x8] sm:$0xff] }
  0xf9   : > { %v1001_v4 = vcombine.high %v1000_v63, %v1000_v63  ;;  %v1008_v5 = vrot.slane %v1000_v63, %v2036_v32  ;;  %v1031_v6 = vcombine.high %v1030_v1, %v1030_v1  ;;  %v1038_v7 = vrot.slane %v1030_v1, %v2036_v32  ;;  %v284_v3 = vld [vmem:[%s257_s9 + $0x10] sm:$0xff] }
  0xfa   : > { %vm1206_vm9 = vcmp.gt.f32.partialorder %v283_v59, 0.0  ;;  %vm1207_vm12 = vcmp.gt.f32.partialorder %v284_v3, 0.0 }
  0xfb   : > { %v1015_v8 = vrot.slane %v1001_v4, %v2036_v32  ;;  %v1016_v9 = vcombine.high %v1008_v5, %v1008_v5  ;;  %1020 = vst.msk [vmem:[#allocation2 + $0x4] sm:$0x1] %vm899_vm2, %v1008_v5  ;;  %v1045_v10 = vrot.slane %v1031_v6, %v2036_v32  ;;  %v1046_v11 = vcombine.high %v1038_v7, %v1038_v7 }
  0xfc   : > { %1050 = vst.msk [vmem:[#allocation2 + $0x5] sm:$0x1] %vm899_vm2, %v1038_v7  ;;  %v795_v12 = vpop.f32.mrf.mxu0  ;;  %v868_v13 = vpop.f32.mrf.mxu1 }
  0xfd   : > { %1021 = vst.msk [vmem:[#allocation2 + $0xc] sm:$0x1] %vm899_vm2, %v1015_v8  ;;  %1022 = vst.msk [vmem:[#allocation2 + $0x14] sm:$0x1] %vm899_vm2, %v1016_v9  ;;  %v1060_v14 = vrot.slane %v795_v12, %v2036_v32  ;;  %v1090_v15 = vrot.slane %v868_v13, %v2036_v32 }
  0xfe   : > { %1051 = vst.msk [vmem:[#allocation2 + $0xd] sm:$0x1] %vm899_vm2, %v1045_v10  ;;  %1052 = vst.msk [vmem:[#allocation2 + $0x15] sm:$0x1] %vm899_vm2, %v1046_v11  ;;  %v1678_v16 = vpop.f32.mrf.mxu0  ;;  %v1685_v17 = vpop.f32.mrf.mxu1 }
  0xff   : > { %v1061_v18 = vcombine.high %v1060_v14, %v1060_v14  ;;  %v1068_v19 = vrot.slane %v1060_v14, %v2036_v32  ;;  %v1091_v20 = vcombine.high %v1090_v15, %v1090_v15  ;;  %v1098_v21 = vrot.slane %v1090_v15, %v2036_v32 }
 0x101   : > { %v1075_v22 = vrot.slane %v1061_v18, %v2036_v32  ;;  %v1076_v23 = vcombine.high %v1068_v19, %v1068_v19  ;;  %1080 = vst.msk [vmem:[#allocation2 + $0x6] sm:$0x1] %vm899_vm2, %v1068_v19  ;;  %v1105_v24 = vrot.slane %v1091_v20, %v2036_v32  ;;  %v1106_v25 = vcombine.high %v1098_v21, %v1098_v21 }
 0x102   : > { %1110 = vst.msk [vmem:[#allocation2 + $0x7] sm:$0x1] %vm899_vm2, %v1098_v21 }
 0x103   : > { %1081 = vst.msk [vmem:[#allocation2 + $0xe] sm:$0x1] %vm899_vm2, %v1075_v22  ;;  %1082 = vst.msk [vmem:[#allocation2 + $0x16] sm:$0x1] %vm899_vm2, %v1076_v23 }
 0x104   : > { %1111 = vst.msk [vmem:[#allocation2 + $0xf] sm:$0x1] %vm899_vm2, %v1105_v24  ;;  %1112 = vst.msk [vmem:[#allocation2 + $0x17] sm:$0x1] %vm899_vm2, %v1106_v25 }
 0x109   : > { %v1113_v26 = vld [vmem:[#allocation2] sm:$0xff] }
 0x10a   : > { %vm1116_vm3 = vcmp.gt.f32.partialorder %v1113_v26, 0.0  ;;  %v1119_v27 = vmul.f32 0.2, %v1113_v26 }
 0x10b   : > { %v1114_v30 = vld [vmem:[#allocation2 + $0x8] sm:$0xff]  ;;  %v1115_v31 = vld [vmem:[#allocation2 + $0x10] sm:$0xff] }
 0x10c   : > { %v1122_v32 = vsel %vm1116_vm3, %v1113_v26, %v1119_v27  ;;  %vm1117_vm4 = vcmp.gt.f32.partialorder %v1114_v30, 0.0  ;;  %v1120_v33 = vmul.f32 0.2, %v1114_v30  ;;  %vm1118_vm5 = vcmp.gt.f32.partialorder %v1115_v31, 0.0 }
 0x10d   : > { %1687 = vmatpush3.msra.mxu0 %v1122_v32  ;;  %v1137_v35 = vmul.f32 %v1122_v32, %v286_v29  ;;  %v1121_v36 = vmul.f32 0.2, %v1115_v31  ;;  %v1125_v40 = vmul.f32 %v1122_v32, %v285_v34 }
 0x10e   : > { %v1123_v37 = vsel %vm1117_vm4, %v1114_v30, %v1120_v33  ;;  %1696 = vmatprep.subr.mxu0 %v1868_v0 }
 0x10f   : > { %1692 = vmatpush3.msra.mxu1 %v1123_v37  ;;  %v1140_v38 = vsel %vm287_vm1, %v1137_v35, 0.0  ;;  %v1138_v39 = vmul.f32 %v1123_v37, %v286_v29  ;;  %v2094_v41 = vsel %vm1118_vm5, %v1115_v31, %v1121_v36  ;;  %v1128_v44 = vsel %vm287_vm1, %v1125_v40, 0.0 }
 0x110   : > { %1141 = vadd.xlane.f32.xlu0 %v1140_v38  ;;  %v1139_v43 = vmul.f32 %v2094_v41, %v286_v29  ;;  %v1126_v45 = vmul.f32 %v1123_v37, %v285_v34  ;;  %v1127_v47 = vmul.f32 %v2094_v41, %v285_v34 }
 0x111   : > { %v1143_v42 = vsel %vm287_vm1, %v1138_v39, 0.0 }
 0x112   : > { %1144 = vadd.xlane.f32.xlu1 %v1143_v42  ;;  %v1146_v46 = vsel %vm287_vm1, %v1139_v43, 0.0  ;;  %v1131_v48 = vsel %vm287_vm1, %v1126_v45, 0.0  ;;  %v1134_v49 = vsel %vm287_vm1, %v1127_v47, 0.0 }
 0x114   : > { %1129 = vadd.xlane.f32.xlu0 %v1128_v44 }
 0x116   : > { %1147 = vadd.xlane.f32.xlu1 %v1146_v46 }
 0x118   : > { %1132 = vadd.xlane.f32.xlu0 %v1131_v48 }
 0x11a   : > { %1135 = vadd.xlane.f32.xlu1 %v1134_v49 }
 0x199   : > { %v1142_v50 = vpop.xlane.xlu0 %1141 }
 0x19a   : > { %v1157_v52 = vrot.slane %v1142_v50, %v2034_v28 }
 0x19b   : > { %v1145_v51 = vpop.xlane.xlu1 %1144 }
 0x19c   : > { %v1161_v57 = vrot.slane %v1145_v51, %v2034_v28 }
 0x19d   : > { %v1130_v53 = vpop.xlane.xlu0 %1129 }
 0x19e   : > { %v1193_v55 = vadd.f32 %v1157_v52, %v1130_v53 }
 0x19f   : > { %v1148_v56 = vpop.xlane.xlu1 %1147 }
 0x1a0   : > { %v1199_v58 = vmul.f32 0.2, %v1193_v55  ;;  %vm1196_vm6 = vcmp.gt.f32.partialorder %v1193_v55, 0.0  ;;  %v1165_v61 = vrot.slane %v1148_v56, %v2034_v28 }
 0x1a1   : > { %v1133_v60 = vpop.xlane.xlu0 %1132 }
 0x1a2   : > { %v1194_v62 = vadd.f32 %v1161_v57, %v1133_v60  ;;  %v1202_v63 = vsel %vm1196_vm6, %v1193_v55, %v1199_v58 }
 0x1a3   : > { %v1136_v1 = vpop.xlane.xlu1 %1135  ;;  %v1208_v2 = vsel %vm1205_vm7, %v1202_v63, -3.4028235e+38 }
 0x1a4   : > { %v1200_v4 = vmul.f32 0.2, %v1194_v62  ;;  %v1195_v5 = vadd.f32 %v1165_v61, %v1136_v1  ;;  %v1212_v6 = vsel %vm1211_vm8, %v1208_v2, -inf  ;;  %vm1197_vm10 = vcmp.gt.f32.partialorder %v1194_v62, 0.0 }
 0x1a5   : > { %1213 = vmax.xlane.f32.xlu0 %v1212_v6 }
 0x1a6   : > { %v1201_v7 = vmul.f32 0.2, %v1195_v5  ;;  %v1203_v8 = vsel %vm1197_vm10, %v1194_v62, %v1200_v4  ;;  %vm1198_vm11 = vcmp.gt.f32.partialorder %v1195_v5, 0.0 }
 0x1a7   : > { %v1209_v9 = vsel %vm1206_vm9, %v1203_v8, -3.4028235e+38 }
 0x1a8   : > { %v1215_v10 = vsel %vm1211_vm8, %v1209_v9, -inf  ;;  %v1204_v28 = vsel %vm1198_vm11, %v1195_v5, %v1201_v7 }
 0x1a9   : > { %1216 = vmax.xlane.f32.xlu1 %v1215_v10  ;;  %v1210_v11 = vsel %vm1207_vm12, %v1204_v28, -3.4028235e+38 }
 0x1aa   : > { %v1218_v12 = vsel %vm1211_vm8, %v1210_v11, -inf }
 0x1ab   : > { %1219 = vmax.xlane.f32.xlu0 %v1218_v12 }
 0x22e   : > { %v1214_v13 = vpop.xlane.xlu0 %1213 }
 0x22f   : > { %v1221_v14 = vsub.f32 %v1208_v2, %v1214_v13 }
 0x231   : > { %v1224_v15 = vmul.f32 1.442695, %v1221_v14 }
 0x232   : > { %v1217_v16 = vpop.xlane.xlu1 %1216 }
 0x233   : > { %1761 = vpow2.f32 %v1224_v15  ;;  %v1222_v17 = vsub.f32 %v1209_v9, %v1217_v16 }
 0x234   : > { %v1220_v18 = vpop.xlane.xlu0 %1219 }
 0x235   : > { %v1226_v19 = vmul.f32 1.442695, %v1222_v17  ;;  %v1223_v20 = vsub.f32 %v1210_v11, %v1220_v18 }
 0x237   : > { %1763 = vpow2.f32 %v1226_v19  ;;  %v1228_v21 = vmul.f32 1.442695, %v1223_v20 }
 0x239   : > { %1765 = vpow2.f32 %v1228_v21 }
 0x240   : > { %v1762_v22 = vpop.eup %1761 }
 0x241   : > { %v1230_v23 = vsel %vm1211_vm8, %v1762_v22, 0.0 }
 0x242   : > { %1231 = vadd.xlane.f32.xlu1 %v1230_v23 }
 0x244   : > { %v1764_v24 = vpop.eup %1763 }
 0x245   : > { %v1233_v25 = vsel %vm1211_vm8, %v1764_v24, 0.0 }
 0x246   : > { %v1766_v26 = vpop.eup %1765  ;;  %1234 = vadd.xlane.f32.xlu0 %v1233_v25 }
 0x247   : > { %v1236_v27 = vsel %vm1211_vm8, %v1766_v26, 0.0 }
 0x248   : > { %1237 = vadd.xlane.f32.xlu1 %v1236_v27 }
 0x2cb   : > { %v1232_v29 = vpop.xlane.xlu1 %1231 }
 0x2cc   : > { %1767 = vrcp.f32 %v1232_v29 }
 0x2cf   : > { %v1235_v30 = vpop.xlane.xlu0 %1234 }
 0x2d0   : > { %1769 = vrcp.f32 %v1235_v30 }
 0x2d1   : > { %v1238_v31 = vpop.xlane.xlu1 %1237 }
 0x2d2   : > { %1771 = vrcp.f32 %v1238_v31 }
 0x2d9   : > { %v1768_v32 = vpop.eup %1767 }
 0x2da   : > { %v1242_v33 = vmul.f32 %v1768_v32, %v1762_v22 }
 0x2dc   : > { %1689 = vmatmul.mubr.msk.f32.vlgmr.msra.gmra.mxu0 %vm1211_vm8, %v1242_v33 }
 0x2dd   : > { %v1770_v34 = vpop.eup %1769  ;;  %1697 = vmatpush3.msra.mxu0 %v2094_v41  ;;  %1698 = vmatprep.mubr.msk.f32.mxu0 %vm1869_vm0, %v1868_v0 }
 0x2de   : > { %v1243_v35 = vmul.f32 %v1770_v34, %v1764_v24 }
 0x2df   : > { %v1772_v36 = vpop.eup %1771 }
 0x2e0   : > { %1694 = vmatmul.mubr.msk.f32.vlgmr.msra.gmra.mxu1 %vm1211_vm8, %v1243_v35  ;;  %v1244_v37 = vmul.f32 %v1772_v36, %v1766_v26 }
 0x2e2   : > { %1699 = vmatmul.mubr.msk.f32.vlgmr.msra.gmra.mxu0 %vm1211_vm8, %v1244_v37 }
 0x39c   : > { %v1314_v38 = vpop.f32.mrf.mxu0 }
 0x39d   : > { %vm1464_vm13 = vcmp.gt.f32.partialorder %v1314_v38, 0.0  ;;  %v1467_v39 = vmul.f32 0.2, %v1314_v38 }
 0x39e   : > { %v1690_v40 = vpop.f32.mrf.mxu0 }
 0x39f   : > { %v1470_v42 = vsel %vm1464_vm13, %v1314_v38, %v1467_v39 }
 0x3a0   : > { %1473 = vst.msk [vmem:[%s247_s12] sm:$0xff] %vm287_vm1, %v1470_v42  ;;  %v1387_v0 = vpop.f32.mrf.mxu1 }
 0x3a1   : > { %vm1465_vm14 = vcmp.gt.f32.partialorder %v1387_v0, 0.0  ;;  %v1468_v41 = vmul.f32 0.2, %v1387_v0 }
 0x3a2   : > { %v1695_v43 = vpop.f32.mrf.mxu1  ;;  %v1460_v44 = vpop.f32.mrf.mxu0 }
 0x3a3   : > { %v1471_v45 = vsel %vm1465_vm14, %v1387_v0, %v1468_v41  ;;  %vm1466_vm15 = vcmp.gt.f32.partialorder %v1460_v44, 0.0  ;;  %v1469_v46 = vmul.f32 0.2, %v1460_v44 }
 0x3a4   : > { %1474 = vst.msk [vmem:[%s247_s12 + $0x8] sm:$0xff] %vm287_vm1, %v1471_v45  ;;  %v1700_v47 = vpop.f32.mrf.mxu0 }
 0x3a5   : > { %v1472_v48 = vsel %vm1466_vm15, %v1460_v44, %v1469_v46 }
 0x3a6   : > { %1475 = vst.msk [vmem:[%s247_s12 + $0x10] sm:$0xff] %vm287_vm1, %v1472_v48 }
 0x3a7   : > { %1812 = shalt.err (!%p1809_p0)
}
 0x3a8   : > { %s1813_s6 = scalar_lea.hbm %s2131_s22, 384  ;;  %s1817_s9 = scalar_lea.hbm %s2179_s5, 768 }
 0x3a9   : > { %p1814_p1 = scmp.ne.s32.totalorder %s2131_s22, %s1813_s6  ;;  %p1818_p4 = scmp.lt.s32.totalorder %s2131_s22, %s2179_s5 }
 0x3aa   : > { %p1819_p7 = scmp.lt.s32.totalorder %s1817_s9, %s1813_s6 }
 0x3ab   : > { %p1815_p2 = pnand %p1814_p1, %p1942_p5 }
 0x3ac   : > { %p1820_p8 = por %p1819_p7, %p1818_p4 }
 0x3ad   : > { %p1816_p3 = pneg %p1815_p2 }
 0x3af   : > { %p1821_p6 = pnand %p1820_p8, %p1816_p3 }
 0x3b1   : > { %1824 = shalt.err (!%p1821_p6)
}
 0x3b2   : > { %s1872_s12 = smov 128   ;;  %s1873_s14 = smov 8  }
 0x3b3   : > { %1708 = dma.vmem_to_hbm [thread:$0]  (%p1942_p5), %s2125_s13, 384, %s2131_s22, %s2134_s17, %s1872_s12, %s1872_s12, %s1873_s14  }
 0x3b4 PF: > { %p1720_p9 = scmp.ge.s32.totalorder %s1863_s21, 2  ;;  %s1505_s15 = sand.u32 1, %s1851_s18  }
 0x3b5   : > { %p2183_p10 = scmp.ne.s32.totalorder %s2181_s29, 0  ;;  %s1506_s16 = scalar_lea.sflag [#allocation5], %s1505_s15 }
 0x3b7   : > { %p1715_p11 = pnand %p1720_p9, %p2183_p10 }
 0x3b9   : > { %p1716_p12 = pneg %p1715_p11 }
 0x3bb   : > { %1846 = dma.done.wait (%p1716_p12), %s1506_s16, 384  }
 0x3bc   : > { %1848 = vsyncadd (%p1716_p12), %s1506_s16, 4294966912  ;;  %p16_p13 = scmp.ge.s32.totalorder %s1929_s24, 4   ;;  %s2184_s18 = smov %s1855_s19 }
 0x3bd   : > { %s2185_s19 = smov %s1859_s20  ;;  %s2186_s20 = smov %s1940_s27 }
 0x3be   : > { %s2187_s21 = smov %s1929_s24  ;;  %18 = sbr.rel (!%p16_p13) target bundleno = 4 (0x4), region = 83 }
 0x3c3   :  { %1511 = vsyncpa [#allocation4], 1 }
 0x3c4   :  { %1513 = vsyncpa [#allocation4 + $0x1], 1 }
 0x3c5   :  { %1514 = vsyncpa [#allocation5], 1 }
 0x3c6   :  { %1516 = vsyncpa [#allocation5 + $0x1], 1 }

</bundles_post_ra>
